<compile_context>
chip_gen: v6e
topology: v6e:2x2x1
jax: 0.10.0
libtpu: 0.0.40
codegen_flags: <defaults>
</compile_context>

<pallas_src>
import functools

import jax
import jax.numpy as jnp
from jax.experimental import pallas as pl
from jax.experimental.pallas import tpu as pltpu

_LANE = 128   # lane width (last dim)
_SUB = 8      # sublane granularity (second-to-last dim)


def _round_up(x, m):
    return ((x + m - 1) // m) * m


def _leaky_relu(x, slope=0.2):
    return jnp.where(x > 0, x, slope * x)


# ---------------------------------------------------------------------------
# Kernels
# ---------------------------------------------------------------------------
def _resblock_kernel_fused(x_ref, w13_ref, b13_ref, w2_ref, b2_ref, o_ref, *,
                           n_hidden: int, final_nl: bool, compute_dtype):
    """Fin != Fout path: one wide matmul covers fc1 and fc3 (shared input x)."""
    x = x_ref[...]                                     # (TB, Fin_p) bf16
    # z = x @ [W1 | W3]  -> (TB, n_hidden + Fout_p), f32 accumulation on MXU.
    z = jnp.dot(x, w13_ref[...], preferred_element_type=jnp.float32) + b13_ref[...]
    h = _leaky_relu(z[:, :n_hidden])                   # fc1 activation (f32)
    xin = _leaky_relu(z[:, n_hidden:])                 # leaky_relu(fc3(x)) (f32)
    y = jnp.dot(h.astype(compute_dtype), w2_ref[...],
                preferred_element_type=jnp.float32) + b2_ref[...]
    out = xin + y
    if final_nl:
        out = _leaky_relu(out)
    o_ref[...] = out.astype(o_ref.dtype)


def _resblock_kernel_identity(x_ref, w1_ref, b1_ref, w2_ref, b2_ref, o_ref, *,
                              final_nl: bool, compute_dtype):
    """Fin == Fout path: residual is rebuilt (in f32) from the streamed bf16 x."""
    xc = x_ref[...]                                    # (TB, F_p) bf16
    h = _leaky_relu(jnp.dot(xc, w1_ref[...],
                            preferred_element_type=jnp.float32) + b1_ref[...])
    y = jnp.dot(h.astype(compute_dtype), w2_ref[...],
                preferred_element_type=jnp.float32) + b2_ref[...]
    out = xc.astype(jnp.float32) + y                   # residual add in f32 vregs
    if final_nl:
        out = _leaky_relu(out)
    o_ref[...] = out.astype(o_ref.dtype)


# ---------------------------------------------------------------------------
# Parameters
# ---------------------------------------------------------------------------
def init_resblock_params(key, Fin, Fout, n_neurons=512, dtype=jnp.float32):
    """Deterministic synthetic parameters. Weights stored as (in, out)."""
    ks = jax.random.split(key, 6)
    scale1 = 1.0 / jnp.sqrt(Fin)
    scale2 = 1.0 / jnp.sqrt(n_neurons)
    params = {
        "w1": jax.random.uniform(ks[0], (Fin, n_neurons), dtype, -scale1, scale1),
        "b1": jax.random.uniform(ks[1], (1, n_neurons), dtype, -scale1, scale1),
        "w2": jax.random.uniform(ks[2], (n_neurons, Fout), dtype, -scale2, scale2),
        "b2": jax.random.uniform(ks[3], (1, Fout), dtype, -scale2, scale2),
    }
    if Fin != Fout:
        params["w3"] = jax.random.uniform(ks[4], (Fin, Fout), dtype, -scale1, scale1)
        params["b3"] = jax.random.uniform(ks[5], (1, Fout), dtype, -scale1, scale1)
    return params


# ---------------------------------------------------------------------------
# Wrapper
# ---------------------------------------------------------------------------
def resblock_forward(x, params, *, final_nl=True, tile_b=1024,
                     compute_dtype=jnp.bfloat16, out_dtype=jnp.float32,
                     vmem_limit_bytes=None):
    """Pallas ResBlock forward. x: (B, Fin) -> (B, Fout) in out_dtype."""
    B, Fin = x.shape
    n_hidden = params["w1"].shape[1]
    Fout = params["w2"].shape[1]
    has_fc3 = "w3" in params
    f32 = jnp.float32

    # Lane-dense padding on the *output* side only (lane-dense stores are the big
    # lever).  The contraction dim (Fin) only needs sublane/packing alignment:
    # the block's last dim may equal the full array dim and K<128 is padded
    # inside the MXU, so no 128-pad of x.
    N_p = _round_up(n_hidden, _LANE)
    Fout_p = _round_up(Fout, _LANE)
    kalign = max(_SUB, 32 // jnp.dtype(compute_dtype).itemsize)   # 16 for bf16
    Fin_p = _round_up(Fin, kalign) if has_fc3 else Fout_p  # identity residual needs Fout_p width

    # Batch tiling: few big tiles (amortize ~0.35us/step), minimal padding waste,
    # and an even step count (>1) so both v7x TensorCores get equal work.
    if B <= tile_b:
        steps = 1
    else:
        steps = pl.cdiv(B, tile_b)
        if steps % 2:
            steps += 1                  # megacore balance on v7x; neutral on v5e/v6e
    tb = _round_up(pl.cdiv(B, steps), _SUB)
    B_p = steps * tb
    grid = (steps,)

    # Single wrapper pass over the activation: cast once, pad only if needed.
    x_c = x.astype(compute_dtype)
    if B_p != B or Fin_p != Fin:
        x_c = jnp.pad(x_c, ((0, B_p - B), (0, Fin_p - Fin)))

    def pad2(a, r, c, dt):
        a = jnp.asarray(a, f32).reshape((-1, a.shape[-1]))
        a = jnp.pad(a, ((0, r - a.shape[0]), (0, c - a.shape[1])))
        return a.astype(dt)

    # TODO(synk): for stacked ResBlocks, pre-pack these weights once outside the
    # hot path and prefetch the next block's weights via a cross-pallas_call DMA
    # future to hide the per-layer weight fetch when B is small (grid of 1-2).
    w2 = pad2(params["w2"], N_p, Fout_p, compute_dtype)
    b2 = pad2(params["b2"], 1, Fout_p, f32)
    if has_fc3:
        w1 = pad2(params["w1"], Fin_p, N_p, f32)
        w3 = pad2(params["w3"], Fin_p, Fout_p, f32)
        w13 = jnp.concatenate([w1, w3], axis=1).astype(compute_dtype)  # (Fin_p, N_p+Fout_p)
        b13 = jnp.concatenate([pad2(params["b1"], 1, N_p, f32),
                               pad2(params["b3"], 1, Fout_p, f32)], axis=1)
        kernel = functools.partial(_resblock_kernel_fused, n_hidden=N_p,
                                   final_nl=final_nl, compute_dtype=compute_dtype)
        args = (x_c, w13, b13, w2, b2)
        in_specs = [
            pl.BlockSpec((tb, Fin_p), lambda i: (i, 0)),              # x: pipelined
            pl.BlockSpec((Fin_p, N_p + Fout_p), lambda i: (0, 0)),    # fused W1|W3: resident
            pl.BlockSpec((1, N_p + Fout_p), lambda i: (0, 0)),        # fused b1|b3: resident
            pl.BlockSpec((N_p, Fout_p), lambda i: (0, 0)),            # W2: resident
            pl.BlockSpec((1, Fout_p), lambda i: (0, 0)),              # b2: resident
        ]
    else:
        w1 = pad2(params["w1"], Fin_p, N_p, compute_dtype)
        b1 = pad2(params["b1"], 1, N_p, f32)
        kernel = functools.partial(_resblock_kernel_identity,
                                   final_nl=final_nl, compute_dtype=compute_dtype)
        args = (x_c, w1, b1, w2, b2)
        in_specs = [
            pl.BlockSpec((tb, Fin_p), lambda i: (i, 0)),
            pl.BlockSpec((Fin_p, N_p), lambda i: (0, 0)),
            pl.BlockSpec((1, N_p), lambda i: (0, 0)),
            pl.BlockSpec((N_p, Fout_p), lambda i: (0, 0)),
            pl.BlockSpec((1, Fout_p), lambda i: (0, 0)),
        ]

    out_spec = pl.BlockSpec((tb, Fout_p), lambda i: (i, 0))
    out_shape = jax.ShapeDtypeStruct((B_p, Fout_p), out_dtype)

    # VMEM budget: resident weights (double-buffered by default) + pipelined
    # x/out tiles + f32 intermediates.  An explicit limit avoids the 16 MiB
    # default scoped ceiling on v5e and compiler-forced tiny tiles on v7x.
    weight_bytes = sum(int(a.size) * a.dtype.itemsize for a in args[1:])
    tile_bytes = (tb * Fin_p * jnp.dtype(compute_dtype).itemsize
                  + tb * Fout_p * jnp.dtype(out_dtype).itemsize)
    if vmem_limit_bytes is None:
        need = 2 * weight_bytes + 2 * tile_bytes + 4 * tb * (N_p + Fout_p) * 4 + (8 << 20)
        vmem_limit_bytes = int(min(max(need, 32 << 20), 128 << 20))
    # TODO(synk): for very large weight configs on v7x (64 MiB VMEM), add
    # pipeline_mode=pl.Buffered(1) on the weight specs and/or K-tile n_hidden
    # over an extra "arbitrary" grid axis with an f32 accumulator scratch.

    flops = 2 * B_p * (Fin_p * N_p + N_p * Fout_p
                       + (Fin_p * Fout_p if has_fc3 else 0))
    bytes_accessed = int(sum(int(a.size) * a.dtype.itemsize for a in args)
                         + B_p * Fout_p * jnp.dtype(out_dtype).itemsize)
    cost = pl.CostEstimate(flops=flops, transcendentals=0,
                           bytes_accessed=bytes_accessed)

    out = pl.pallas_call(
        kernel,
        out_shape=out_shape,
        grid=grid,
        in_specs=in_specs,
        out_specs=out_spec,
        compiler_params=pltpu.CompilerParams(
            dimension_semantics=("parallel",),          # 2 TensorCores on v7x
            vmem_limit_bytes=vmem_limit_bytes),
        cost_estimate=cost,
    )(*args)
    # TODO(synk): consumers that accept the padded (B_p, Fout_p) layout can skip
    # this slice copy entirely.
    return out[:B, :Fout]


# ---------------------------------------------------------------------------
# Pure-JAX reference (same bf16-in / f32-accumulate math as the kernel)
# ---------------------------------------------------------------------------
def resblock_ref(x, params, *, final_nl=True, compute_dtype=jnp.bfloat16):
    f32 = jnp.float32

    def dot(a, b):
        return jnp.dot(a.astype(compute_dtype), b.astype(compute_dtype),
                       preferred_element_type=f32)

    if "w3" in params:
        xin = _leaky_relu(dot(x, params["w3"]) + params["b3"].astype(f32))
    else:
        # The kernel streams x in compute_dtype and rebuilds the residual from it.
        xin = x.astype(compute_dtype).astype(f32)
    h = _leaky_relu(dot(x, params["w1"]) + params["b1"].astype(f32))
    y = dot(h, params["w2"]) + params["b2"].astype(f32)
    out = xin + y
    return _leaky_relu(out) if final_nl else out


if __name__ == "__main__":
    # Small shapes consistent with the module: Fin=32, Fout=64, n_neurons=128.
    Fin, Fout, n_neurons = 32, 64, 128
    key = jax.random.PRNGKey(0)
    kx, kp = jax.random.split(key)
    params = init_resblock_params(kp, Fin, Fout, n_neurons)

    # 1) tiny batch (single grid step), Fin != Fout fused path
    x = jax.random.normal(kx, (8, Fin), dtype=jnp.float32)
    out = jax.block_until_ready(resblock_forward(x, params, final_nl=True))
    ref = resblock_ref(x, params, final_nl=True)
    assert out.shape == (8, Fout)
    assert jnp.allclose(out, ref, atol=2e-3, rtol=2e-3), "mismatch (fused, final_nl)"

    # 2) final_nl=False
    out2 = jax.block_until_ready(resblock_forward(x, params, final_nl=False))
    assert jnp.allclose(out2, resblock_ref(x, params, final_nl=False),
                        atol=2e-3, rtol=2e-3), "mismatch (final_nl=False)"

    # 3) Fin == Fout identity-skip path (bf16-streamed residual)
    params_sq = init_resblock_params(kp, Fout, Fout, n_neurons)
    x_sq = jax.random.normal(kx, (8, Fout), dtype=jnp.float32)
    out3 = jax.block_until_ready(resblock_forward(x_sq, params_sq, final_nl=True))
    assert jnp.allclose(out3, resblock_ref(x_sq, params_sq, final_nl=True),
                        atol=2e-3, rtol=2e-3), "mismatch (identity path)"

    # 4) larger batch exercising a multi-step, even grid (600 -> 4 x 152 rows)
    x_big = jax.random.normal(kx, (600, Fin), dtype=jnp.float32)
    out4 = jax.block_until_ready(resblock_forward(x_big, params, final_nl=True,
                                                  tile_b=256))
    assert out4.shape == (600, Fout)
    assert jnp.allclose(out4, resblock_ref(x_big, params, final_nl=True),
                        atol=2e-3, rtol=2e-3), "mismatch (multi-tile grid)"

    # 5) bf16 output option (halved writeback)
    out5 = jax.block_until_ready(
        resblock_forward(x, params, final_nl=True, out_dtype=jnp.bfloat16))
    assert out5.dtype == jnp.bfloat16
    assert jnp.allclose(out5.astype(jnp.float32), ref, atol=3e-2, rtol=3e-2), \
        "mismatch (bf16 output)"

    print("KERNEL_OK")
</pallas_src>

<mosaic_0001>
module attributes {stable_mosaic.version = 11 : i64} {
  func.func @_resblock_kernel_fused(%arg0: i32, %arg1: memref<8x32xbf16, #tpu.memory_space<vmem>>, %arg2: memref<32x256xbf16, #tpu.memory_space<vmem>>, %arg3: memref<1x256xf32, #tpu.memory_space<vmem>>, %arg4: memref<128x128xbf16, #tpu.memory_space<vmem>>, %arg5: memref<1x128xf32, #tpu.memory_space<vmem>>, %arg6: memref<8x128xf32, #tpu.memory_space<vmem>>) attributes {dimension_semantics = [#tpu.dimension_semantics<parallel>], iteration_bounds = array<i64: 1>, scalar_prefetch = 0 : i64, scratch_operands = 0 : i64, tpu.core_type = #tpu.core_type<tc>, window_params = [{transform_indices = @transform_0, window_bounds = array<i64: 8, 32>}, {pipeline_mode = #tpu.pipeline_mode<synchronous>, transform_indices = @transform_1, window_bounds = array<i64: 32, 256>}, {pipeline_mode = #tpu.pipeline_mode<synchronous>, transform_indices = @transform_2, window_bounds = array<i64: 1, 256>}, {pipeline_mode = #tpu.pipeline_mode<synchronous>, transform_indices = @transform_3, window_bounds = array<i64: 128, 128>}, {pipeline_mode = #tpu.pipeline_mode<synchronous>, transform_indices = @transform_4, window_bounds = array<i64: 1, 128>}, {transform_indices = @transform_5, window_bounds = array<i64: 8, 128>}]} {
    %c0 = arith.constant 0 : index
    %c0_0 = arith.constant 0 : index
    %0 = vector.load %arg1[%c0, %c0_0] : memref<8x32xbf16, #tpu.memory_space<vmem>>, vector<8x32xbf16>
    %c0_1 = arith.constant 0 : index
    %c0_2 = arith.constant 0 : index
    %1 = vector.load %arg2[%c0_1, %c0_2] : memref<32x256xbf16, #tpu.memory_space<vmem>>, vector<32x256xbf16>
    %cst = arith.constant dense<0.000000e+00> : vector<8x256xf32>
    %2 = tpu.matmul %0, %1, %cst {dimension_numbers = #tpu.dot_dimension_numbers<[1], [0], [0], [1], [0, 0, 1, 1], [], []>} : vector<8x32xbf16>, vector<32x256xbf16>, vector<8x256xf32> -> vector<8x256xf32>
    %c0_3 = arith.constant 0 : index
    %c0_4 = arith.constant 0 : index
    %3 = vector.load %arg3[%c0_3, %c0_4] : memref<1x256xf32, #tpu.memory_space<vmem>>, vector<1x256xf32>
    %4 = vector.broadcast %3 : vector<1x256xf32> to vector<8x256xf32>
    %5 = arith.addf %2, %4 : vector<8x256xf32>
    %6 = vector.extract_strided_slice %5 {offsets = [0, 0], sizes = [8, 128], strides = [1, 1]} : vector<8x256xf32> to vector<8x128xf32>
    %cst_5 = arith.constant 0.000000e+00 : f32
    %7 = vector.broadcast %cst_5 : f32 to vector<8x128xf32>
    %8 = arith.cmpf ogt, %6, %7 : vector<8x128xf32>
    %cst_6 = arith.constant 2.000000e-01 : f32
    %9 = vector.broadcast %cst_6 : f32 to vector<8x128xf32>
    %10 = arith.mulf %9, %6 : vector<8x128xf32>
    %11 = arith.select %8, %6, %10 : vector<8x128xi1>, vector<8x128xf32>
    %12 = vector.extract_strided_slice %5 {offsets = [0, 128], sizes = [8, 128], strides = [1, 1]} : vector<8x256xf32> to vector<8x128xf32>
    %cst_7 = arith.constant 0.000000e+00 : f32
    %13 = vector.broadcast %cst_7 : f32 to vector<8x128xf32>
    %14 = arith.cmpf ogt, %12, %13 : vector<8x128xf32>
    %cst_8 = arith.constant 2.000000e-01 : f32
    %15 = vector.broadcast %cst_8 : f32 to vector<8x128xf32>
    %16 = arith.mulf %15, %12 : vector<8x128xf32>
    %17 = arith.select %14, %12, %16 : vector<8x128xi1>, vector<8x128xf32>
    %18 = arith.truncf %11 : vector<8x128xf32> to vector<8x128xbf16>
    %c0_9 = arith.constant 0 : index
    %c0_10 = arith.constant 0 : index
    %19 = vector.load %arg4[%c0_9, %c0_10] : memref<128x128xbf16, #tpu.memory_space<vmem>>, vector<128x128xbf16>
    %cst_11 = arith.constant dense<0.000000e+00> : vector<8x128xf32>
    %20 = tpu.matmul %18, %19, %cst_11 {dimension_numbers = #tpu.dot_dimension_numbers<[1], [0], [0], [1], [0, 0, 1, 1], [], []>} : vector<8x128xbf16>, vector<128x128xbf16>, vector<8x128xf32> -> vector<8x128xf32>
    %c0_12 = arith.constant 0 : index
    %c0_13 = arith.constant 0 : index
    %21 = vector.load %arg5[%c0_12, %c0_13] : memref<1x128xf32, #tpu.memory_space<vmem>>, vector<1x128xf32>
    %22 = vector.broadcast %21 : vector<1x128xf32> to vector<8x128xf32>
    %23 = arith.addf %20, %22 : vector<8x128xf32>
    %24 = arith.addf %17, %23 : vector<8x128xf32>
    %cst_14 = arith.constant 0.000000e+00 : f32
    %25 = vector.broadcast %cst_14 : f32 to vector<8x128xf32>
    %26 = arith.cmpf ogt, %24, %25 : vector<8x128xf32>
    %cst_15 = arith.constant 2.000000e-01 : f32
    %27 = vector.broadcast %cst_15 : f32 to vector<8x128xf32>
    %28 = arith.mulf %27, %24 : vector<8x128xf32>
    %29 = arith.select %26, %24, %28 : vector<8x128xi1>, vector<8x128xf32>
    %c0_16 = arith.constant 0 : index
    %c0_17 = arith.constant 0 : index
    %30 = vector.load %arg6[%c0_16, %c0_17] : memref<8x128xf32, #tpu.memory_space<vmem>>, vector<8x128xf32>
    tpu.vector_store %arg6[%c0_16, %c0_17], %29 {strides = array<i32>} : memref<8x128xf32, #tpu.memory_space<vmem>>, vector<8x128xf32>,
    return
  }
  func.func @transform_0(%arg0: i32) -> (i32, i32) {
    %c0_i32 = arith.constant 0 : i32
    %c0_i32_0 = arith.constant 0 : i32
    return %arg0, %c0_i32 : i32, i32
  }
  func.func @transform_1(%arg0: i32) -> (i32, i32) {
    %c0_i32 = arith.constant 0 : i32
    %c0_i32_0 = arith.constant 0 : i32
    %c0_i32_1 = arith.constant 0 : i32
    return %c0_i32, %c0_i32_0 : i32, i32
  }
  func.func @transform_2(%arg0: i32) -> (i32, i32) {
    %c0_i32 = arith.constant 0 : i32
    %c0_i32_0 = arith.constant 0 : i32
    %c0_i32_1 = arith.constant 0 : i32
    return %c0_i32, %c0_i32_0 : i32, i32
  }
  func.func @transform_3(%arg0: i32) -> (i32, i32) {
    %c0_i32 = arith.constant 0 : i32
    %c0_i32_0 = arith.constant 0 : i32
    %c0_i32_1 = arith.constant 0 : i32
    return %c0_i32, %c0_i32_0 : i32, i32
  }
  func.func @transform_4(%arg0: i32) -> (i32, i32) {
    %c0_i32 = arith.constant 0 : i32
    %c0_i32_0 = arith.constant 0 : i32
    %c0_i32_1 = arith.constant 0 : i32
    return %c0_i32, %c0_i32_0 : i32, i32
  }
  func.func @transform_5(%arg0: i32) -> (i32, i32) {
    %c0_i32 = arith.constant 0 : i32
    %c0_i32_0 = arith.constant 0 : i32
    return %arg0, %c0_i32 : i32, i32
  }
}

</mosaic_0001>

<bundles_post_ra>
// kernel: tpu_custom_call.1
= control target key start
LH: loop header
LB: loop body
LE: loop exit
PB: predicated region body
PF: predicated region fallthrough
CT: control target
= control target key end

     0   :  { %10 = vsyncpa [#allocation3], 0  ;;  %s495_s0 = inlined_call_operand.hbm [shape: bf16[8,32], index: 0, kind: input, shape index: {}]   ;;  %s496_s1 = inlined_call_operand.hbm [shape: bf16[32,256], index: 1, kind: input, shape index: {}]   ;;  %s497_s2 = inlined_call_operand.vmem [shape: f32[1,256], index: 2, kind: input, shape index: {}]   ;;  %s498_s3 = inlined_call_operand.hbm [shape: bf16[128,128], index: 3, kind: input, shape index: {}]   ;;  %s499_s4 = inlined_call_operand.vmem [shape: f32[1,128], index: 4, kind: input, shape index: {}]   ;;  %s500_s5 = inlined_call_operand.hbm [shape: f32[8,128], index: 5, kind: output, shape index: {}]  }
   0x1   :  { %11 = vsyncpa [#allocation6], 0 }
   0x2   :  { %12 = vsyncpa [#allocation4], 0  ;;  %s436_s18 = smov [#allocation5]  }
   0x3   :  { %s28_s19 = sshll.u32 %s436_s18, 4  ;;  %s29_s19 = int_to_ptr.vmem [resolvable:$true] %s28_s19 }
   0x4   :  { %s358_s20 = scalar_lea.vmem %s29_s19, 512  ;;  %p363_p1 = scmp.lt.s32.totalorder %s29_s19, %s29_s19 }
   0x5   :  { %p359_p0 = scmp.ne.s32.totalorder %s29_s19, %s358_s20  ;;  %p364_p2 = scmp.lt.s32.totalorder %s358_s20, %s358_s20 }
   0x7   :  { %p365_p3 = por %p364_p2, %p363_p1 }
   0x9   :  { %p366_p4 = pnand %p365_p3, %p359_p0 }
   0xb   :  { %369 = shalt.err (!%p366_p4)
}
   0xc   :  { %s437_s21 = smov 128   ;;  %s438_s22 = smov 8  }
   0xd   :  { %34 = dma.hbm_to_vmem [thread:$0]  %s496_s1, 512, %s29_s19, [#allocation6], %s437_s21, %s437_s21, %s438_s22  }
   0xe   :  { %s439_s25 = smov [#allocation2]   ;;  %s440_s27 = smov [#allocation7]  }
   0xf   :  { %s19_s26 = sshll.u32 %s439_s25, 4  ;;  %s42_s28 = sshll.u32 %s440_s27, 4  ;;  %s20_s26 = int_to_ptr.vmem [resolvable:$true] %s19_s26  ;;  %s43_s28 = int_to_ptr.vmem [resolvable:$true] %s42_s28 }
  0x10   :  { %s378_s29 = scalar_lea.vmem %s20_s26, 64  ;;  %p383_p6 = scmp.lt.s32.totalorder %s20_s26, %s20_s26 }
  0x11   :  { %p379_p5 = scmp.ne.s32.totalorder %s20_s26, %s378_s29  ;;  %p384_p7 = scmp.lt.s32.totalorder %s378_s29, %s378_s29 }
  0x13   :  { %p385_p8 = por %p384_p7, %p383_p6 }
  0x15   :  { %p386_p9 = pnand %p385_p8, %p379_p5 }
  0x17   :  { %389 = shalt.err (!%p386_p9)
}
  0x18   :  { %22 = dma.hbm_to_vmem [thread:$0]  %s495_s0, 64, %s20_s26, [#allocation3]  }
  0x19   :  { %s398_s7 = scalar_lea.vmem %s43_s28, 1024  ;;  %p403_p11 = scmp.lt.s32.totalorder %s43_s28, %s43_s28 }
  0x1a   :  { %p399_p10 = scmp.ne.s32.totalorder %s43_s28, %s398_s7  ;;  %p404_p12 = scmp.lt.s32.totalorder %s398_s7, %s398_s7 }
  0x1c   :  { %p405_p13 = por %p404_p12, %p403_p11 }
  0x1e   :  { %p406_p0 = pnand %p405_p13, %p399_p10 }
  0x20   :  { %409 = shalt.err (!%p406_p0)
}
  0x21   :  { %s441_s1 = smov 64   ;;  %s442_s8 = smov 4  }
  0x22   :  { %48 = dma.hbm_to_vmem [thread:$0]  %s498_s3, 1024, %s43_s28, [#allocation6], %s441_s1, %s441_s1, %s442_s8  }
  0x23   :  { %430 = dma.done.wait [#allocation3], 64  }
  0x24   :  { %431 = vsyncadd [#allocation3], 4294967232 }
  0x25   :  { %432 = dma.done.wait [#allocation6], 1536  }
  0x26   :  { %433 = vsyncadd [#allocation6], 4294965760  ;;  %v443_v0 = vmov 0   ;;  %v444_v1 = vmov 0.0   ;;  %v336_v2 = vld [vmem:[#allocation5 + $0x14] ss:$8 sps:$4 sm:$0xff]   ;;  %v68_v15 = vlaneseq }
  0x27   :  { %134 = vmatprep.mubr.bf16.mxu0 %v443_v0  ;;  %305 = vmatprep.subr.bf16.mxu1 %v444_v1  ;;  %v338_v3 = vld [vmem:[#allocation5 + $0x10] ss:$8 sps:$4 sm:$0xff]   ;;  %v339_v4 = vld [vmem:[#allocation5 + $0x4] ss:$8 sps:$4 sm:$0xff]   ;;  %v341_v5 = vld [vmem:[#allocation5] ss:$8 sps:$4 sm:$0xff]  }
  0x28   :  { %114 = vmatprep.subr.bf16.mxu0 %v336_v2  ;;  %v342_v6 = vld [vmem:[#allocation7 + $0x38] sm:$0xff]   ;;  %v343_v7 = vld [vmem:[#allocation7 + $0x30] sm:$0xff]   ;;  %vm98_vm0 = vcmask 261120   ;;  %v344_v9 = vld [vmem:[#allocation7 + $0x28] sm:$0xff]   ;;  %vm445_vm1 = vmmov 0   ;;  %v69_v16 = vshrl.u32 %v68_v15, 7 }
  0x29   :  { %115 = vmatpush1.bf16.msra.mxu0 %v338_v3  ;;  %306 = vmatpush3.bf16.msra.mxu1 %v342_v6  ;;  %v61_v8 = vld [vmem:[#allocation2] sm:$0xf]  ;;  %v345_v10 = vld [vmem:[#allocation7 + $0x20] sm:$0xff]   ;;  %v347_v12 = vld [vmem:[#allocation7 + $0x10] sm:$0xff]  }
  0x2a   :  { %116 = vmatprep.subr.bf16.mxu0 %v339_v4  ;;  %307 = vmatprep.subr.bf16.mxu1 %v444_v1  ;;  %v346_v11 = vld [vmem:[#allocation7 + $0x18] sm:$0xff]   ;;  %v348_v13 = vld [vmem:[#allocation7 + $0x8] sm:$0xff]   ;;  %v349_v14 = vld [vmem:[#allocation7] sm:$0xff]   ;;  %v70_v17 = vsub.s32 0, %v69_v16  ;;  %v74_v28 = vsub.s32 1, %v69_v16 }
  0x2b   :  { %321 = vmatprep.mubr.msk.bf16.mxu1 %vm445_vm1, %v444_v1  ;;  %v66_v18 = vld [vmem:[%s497_s2] sm:$0x3]  ;;  %s446_s2 = smov [#allocation8]  }
  0x2c   :  { %v71_v19 = vrot.slane %v66_v18, %v70_v17  ;;  %v75_v29 = vrot.slane %v66_v18, %v74_v28  ;;  %v287_v32 = vld [vmem:[%s499_s4] ss:$0 sm:$0xff]  ;;  %s272_s13 = sshll.u32 %s446_s2, 4  ;;  %s273_s13 = int_to_ptr.vmem [resolvable:$true] %s272_s13 }
  0x2d   :  { %117 = vmatpush1.bf16.msra.mxu0 %v341_v5  ;;  %308 = vmatpush3.bf16.msra.mxu1 %v343_v7  ;;  %s410_s14 = scalar_lea.vmem %s273_s13, 128  ;;  %p415_p2 = scmp.lt.s32.totalorder %s273_s13, %s273_s13 }
  0x2e   :  { %309 = vmatprep.subr.bf16.mxu1 %v444_v1  ;;  %p411_p1 = scmp.ne.s32.totalorder %s273_s13, %s410_s14  ;;  %p416_p3 = scmp.lt.s32.totalorder %s410_s14, %s410_s14 }
  0x30   :  { %286 = vmatmul.mubr.msk.bf16.vlgmr.msra.gmra.mxu0 %vm98_vm0, %v61_v8  ;;  %p417_p4 = por %p416_p3, %p415_p2 }
  0x31   :  { %310 = vmatpush3.bf16.msra.mxu1 %v344_v9 }
  0x32   :  { %311 = vmatprep.subr.bf16.mxu1 %v444_v1  ;;  %p418_p5 = pnand %p417_p4, %p411_p1 }
  0x35   :  { %312 = vmatpush3.bf16.msra.mxu1 %v345_v10 }
  0x36   :  { %313 = vmatprep.subr.bf16.mxu1 %v444_v1 }
  0x39   :  { %314 = vmatpush3.bf16.msra.mxu1 %v346_v11 }
  0x3a   :  { %315 = vmatprep.subr.bf16.mxu1 %v444_v1 }
  0x3d   :  { %316 = vmatpush3.bf16.msra.mxu1 %v347_v12 }
  0x3e   :  { %317 = vmatprep.subr.bf16.mxu1 %v444_v1 }
  0x41   :  { %318 = vmatpush3.bf16.msra.mxu1 %v348_v13 }
  0x42   :  { %319 = vmatprep.subr.bf16.mxu1 %v444_v1 }
  0x45   :  { %320 = vmatpush3.bf16.msra.mxu1 %v349_v14 }
  0xf0   :  { %v136_v20 = vpop.f32.mrf.mxu0 }
  0xf1   :  { %v137_v21 = vadd.f32 %v136_v20, %v71_v19 }
  0xf2   :  { %v138_v22 = vpop.f32.mrf.mxu0 }
  0xf3   :  { %vm143_vm2 = vcmp.gt.f32.partialorder %v137_v21, 0.0  ;;  %v144_v23 = vmul.f32 0.2, %v137_v21  ;;  %v139_v30 = vadd.f32 %v138_v22, %v75_v29 }
  0xf4   :  { %v140_v24 = vpop.f32.mrf.mxu0 }
  0xf5   :  { %v145_v25 = vsel %vm143_vm2, %v137_v21, %v144_v23  ;;  %v147_v31 = vmul.f32 0.2, %v139_v30  ;;  %vm146_vm3 = vcmp.gt.f32.partialorder %v139_v30, 0.0 }
  0xf6   :  { %v141_v26 = vpop.f32.mrf.mxu0  ;;  %v149_v27 = vpack.c.bf16 %v145_v25, %v145_v25 }
  0xf7   :  { %v148_v35 = vsel %vm146_vm3, %v139_v30, %v147_v31 }
  0xf8   :  { %322 = vmatmul.mubr.bf16.vlgmr.msra.gmra.mxu1 %v149_v27 }
 0x1b8   :  { %v255_v33 = vpop.f32.mrf.mxu1 }
 0x1b9   :  { %v256_v34 = vadd.f32 %v287_v32, %v255_v33 }
 0x1ba   :  { %v323_v36 = vpop.f32.mrf.mxu1 }
 0x1bb   :  { %v261_v37 = vadd.f32 %v256_v34, %v148_v35 }
 0x1bc   :  { %v258_v38 = vpop.f32.mrf.mxu1 }
 0x1bd   :  { %v263_v39 = vmul.f32 0.2, %v261_v37  ;;  %vm262_vm4 = vcmp.gt.f32.partialorder %v261_v37, 0.0 }
 0x1be   :  { %v324_v40 = vpop.f32.mrf.mxu1 }
 0x1bf   :  { %v264_v41 = vsel %vm262_vm4, %v261_v37, %v263_v39 }
 0x1c0   :  { %265 = vst [vmem:[#allocation8] sm:$0xff] %v264_v41 }
 0x1c1   :  { %421 = shalt.err (!%p418_p5)
}
 0x1c2   :  { %275 = dma.vmem_to_hbm [thread:$0]  %s273_s13, 128, %s500_s5, [#allocation4]  }
 0x1c3   :  { %434 = dma.done.wait [#allocation4], 128  }
 0x1c4   :  { %435 = vsyncadd [#allocation4], 4294967168 }
 0x1c5   :  { %279 = vsyncpa [#allocation3], 1 }
 0x1c6   :  { %280 = vsyncpa [#allocation6], 1 }
 0x1c7   :  { %281 = vsyncpa [#allocation4], 1 }

</bundles_post_ra>
